<compile_context>
chip_gen: v6e
topology: v6e:2x2x1
jax: 0.10.0
libtpu: 0.0.40
codegen_flags: <defaults>
</compile_context>

<pallas_src>
import functools

import jax
import jax.numpy as jnp
from jax.experimental import pallas as pl
from jax.experimental.pallas import tpu as pltpu

MARGIN = 2.0
EPS = 1e-6  # matches torch.nn.functional.pairwise_distance default eps

# Dispatch the Pallas kernel only when the streamed inputs are at least this big;
# below that, XLA-fused pure JAX is strictly faster (per-step + dispatch overhead).
_MIN_PALLAS_BYTES = 2 * 1024 * 1024


def _round_up(x, m):
    return ((x + m - 1) // m) * m


def _sublane_align(dtype):
    # Sublane packing: f32 -> 8, bf16 -> 16, int8/fp8 -> 32.
    return max(8, 32 // jnp.dtype(dtype).itemsize)


def _vmem_budget():
    """(working VMEM budget for streamed buffers, vmem_limit_bytes)."""
    # Conservative defaults that are safe on v7x (64 MiB physical VMEM).
    budget, limit = 24 * 1024 * 1024, 32 * 1024 * 1024
    try:
        info = pltpu.get_tpu_info()
        vmem = getattr(info, "vmem_capacity_bytes", None)
        if vmem is not None and vmem >= 128 * 1024 * 1024:
            # v5e / v6e: 128 MiB physical -> bigger slabs, fewer grid steps.
            budget, limit = 48 * 1024 * 1024, 64 * 1024 * 1024
    except Exception:
        pass
    return budget, limit


def _choose_b_tile(B, D, feat_dtype, label_dtype, budget):
    """Largest sublane-aligned batch tile whose lane-padded VMEM footprint fits."""
    feat_item = jnp.dtype(feat_dtype).itemsize
    lbl_item = jnp.dtype(label_dtype).itemsize
    lane_d = _round_up(D, 128)  # VMEM stores (b_tile, D) lane-padded to 128
    # Per-row footprint of one pipeline buffer set:
    #   two feature blocks (native dtype, lane-padded) + one label block
    #   ((b_tile, 1) padded to 128 lanes).
    bytes_per_row = 2 * lane_d * feat_item + 128 * lbl_item
    rows = budget // (2 * bytes_per_row)  # x2: double-buffered pipeline
    align = max(_sublane_align(feat_dtype), _sublane_align(label_dtype))
    rows = max(align, (rows // align) * align)
    rows = min(rows, _round_up(B, align))
    return int(rows)


def _rev_contrastive_kernel(out1_ref, out2_ref, label_ref, partial_ref,
                            *, true_b, b_tile, margin, eps, ragged):
    # Cast to f32 in-kernel (VPU has huge slack; the op is HBM-bound).
    x1 = out1_ref[...].astype(jnp.float32)                 # (B_TILE, D)
    x2 = out2_ref[...].astype(jnp.float32)                 # (B_TILE, D)
    lbl = label_ref[...].astype(jnp.float32)               # (B_TILE, 1)

    diff = x1 - x2 + eps                                   # pairwise_distance eps
    d2 = jnp.sum(diff * diff, axis=-1, keepdims=True)      # (B_TILE, 1)
    d = jnp.sqrt(d2)                                       # euclidean distance

    hinge = jnp.maximum(margin - d, 0.0)                   # clamp(margin - d, 0)
    # d2 used directly for the positive term (no redundant sqrt->square).
    per_row = lbl * d2 + (1.0 - lbl) * (hinge * hinge)     # (B_TILE, 1)

    if ragged:
        # Only emitted when B % b_tile != 0: mask padded rows of the final tile.
        # Keep this a select (garbage/NaN in padded rows must not propagate).
        i = pl.program_id(0)
        row_idx = i * b_tile + jax.lax.broadcasted_iota(jnp.int32, (b_tile, 1), 0)
        per_row = jnp.where(row_idx < true_b, per_row, 0.0)

    # Independent per-tile partial sum -> "parallel" batch axis (megacore on v7x).
    partial_ref[...] = jnp.reshape(jnp.sum(per_row), (1, 1, 1))


def _reference(out1, out2, label, margin=MARGIN, eps=EPS):
    # Pure-JAX reference (also the small-input fast path).
    x1 = out1.astype(jnp.float32)
    x2 = out2.astype(jnp.float32)
    lbl = jnp.reshape(label, (x1.shape[0], 1)).astype(jnp.float32)
    d = jnp.sqrt(jnp.sum((x1 - x2 + eps) ** 2, axis=-1, keepdims=True))
    per = lbl * d ** 2 + (1.0 - lbl) * jnp.maximum(margin - d, 0.0) ** 2
    return jnp.mean(per)


def rev_contrastive_loss(out1, out2, label, *, margin=MARGIN,
                         force_pallas=False, b_tile=None):
    """out1, out2: (B, D); label: (B, 1) or (B,). Returns scalar f32 loss."""
    B, D = out1.shape
    label = jnp.reshape(label, (B, 1))
    if not jnp.issubdtype(label.dtype, jnp.floating):
        label = label.astype(jnp.float32)   # tiny (B,1) cast; keeps kernel simple

    streamed_bytes = 2 * B * D * jnp.dtype(out1.dtype).itemsize
    if not force_pallas and streamed_bytes < _MIN_PALLAS_BYTES:
        # Tiny problem: the kernel would be pure dispatch overhead.
        return _reference(out1, out2, label, margin)

    budget, vmem_limit = _vmem_budget()
    align = max(_sublane_align(out1.dtype), _sublane_align(label.dtype))
    if b_tile is None:
        b_tile = _choose_b_tile(B, D, out1.dtype, label.dtype, budget)
    b_tile = max(align, (int(b_tile) // align) * align)
    b_tile = min(b_tile, _round_up(B, align))
    num_tiles = int(pl.cdiv(B, b_tile))
    ragged = (B % b_tile) != 0

    kernel = functools.partial(
        _rev_contrastive_kernel,
        true_b=B, b_tile=b_tile, margin=float(margin), eps=float(EPS),
        ragged=ragged)

    partials = pl.pallas_call(
        kernel,
        out_shape=jax.ShapeDtypeStruct((num_tiles, 1, 1), jnp.float32),
        grid_spec=pltpu.PrefetchScalarGridSpec(
            num_scalar_prefetch=0,
            grid=(num_tiles,),
            in_specs=[
                pl.BlockSpec((b_tile, D), lambda i: (i, 0)),   # native dtype stream
                pl.BlockSpec((b_tile, D), lambda i: (i, 0)),   # native dtype stream
                pl.BlockSpec((b_tile, 1), lambda i: (i, 0)),   # label
            ],
            out_specs=pl.BlockSpec((1, 1, 1), lambda i: (i, 0, 0)),
        ),
        compiler_params=pltpu.CompilerParams(
            # Independent per-tile partials -> batch axis can shard across both
            # TensorCores on v7x; neutral on single-TC v5e/v6e.
            dimension_semantics=("parallel",),
            vmem_limit_bytes=vmem_limit,
        ),
    )(out1, out2, label)

    # torch.mean over the (B, 1) tensor -> divide by the true B.
    return jnp.sum(partials) / float(B)


if __name__ == "__main__":
    key = jax.random.PRNGKey(0)
    keys = jax.random.split(key, 9)

    # --- Test 1: small siamese-embedding shapes, single tile, f32 ----------------
    B, D = 8, 32
    out1 = jax.random.normal(keys[0], (B, D), dtype=jnp.float32)
    out2 = jax.random.normal(keys[1], (B, D), dtype=jnp.float32)
    label = jax.random.bernoulli(keys[2], p=0.5, shape=(B, 1)).astype(jnp.float32)

    loss = jax.block_until_ready(
        rev_contrastive_loss(out1, out2, label, force_pallas=True))
    ref = _reference(out1, out2, label)
    assert jnp.allclose(loss, ref, rtol=1e-5, atol=1e-5), (loss, ref)

    # --- Test 2: multi-tile grid with a ragged final tile (mask + partials), f32 -
    B2, D2 = 40, 32
    o1 = jax.random.normal(keys[3], (B2, D2), dtype=jnp.float32)
    o2 = jax.random.normal(keys[4], (B2, D2), dtype=jnp.float32)
    lb = jax.random.bernoulli(keys[5], p=0.5, shape=(B2, 1)).astype(jnp.float32)

    loss2 = jax.block_until_ready(
        rev_contrastive_loss(o1, o2, lb, force_pallas=True, b_tile=16))  # grid=3, ragged
    ref2 = _reference(o1, o2, lb)
    assert jnp.allclose(loss2, ref2, rtol=1e-5, atol=1e-5), (loss2, ref2)

    # --- Test 3: bf16 features streamed in native dtype (no wrapper up-cast) ------
    B3, D3 = 40, 64
    o1b = jax.random.normal(keys[6], (B3, D3), dtype=jnp.float32).astype(jnp.bfloat16)
    o2b = jax.random.normal(keys[7], (B3, D3), dtype=jnp.float32).astype(jnp.bfloat16)
    lbb = jax.random.bernoulli(keys[8], p=0.5, shape=(B3, 1)).astype(jnp.float32)

    loss3 = jax.block_until_ready(
        rev_contrastive_loss(o1b, o2b, lbb, force_pallas=True, b_tile=16))
    ref3 = _reference(o1b, o2b, lbb)
    assert jnp.allclose(loss3, ref3, rtol=1e-4, atol=1e-4), (loss3, ref3)

    print("KERNEL_OK")
</pallas_src>

<mosaic_0001>
module attributes {stable_mosaic.version = 11 : i64} {
  func.func @_rev_contrastive_kernel(%arg0: i32, %arg1: memref<8x32xf32, #tpu.memory_space<vmem>>, %arg2: memref<8x32xf32, #tpu.memory_space<vmem>>, %arg3: memref<8x1xf32, #tpu.memory_space<vmem>>, %arg4: memref<1x1x1xf32, #tpu.memory_space<vmem>>) attributes {dimension_semantics = [#tpu.dimension_semantics<parallel>], iteration_bounds = array<i64: 1>, scalar_prefetch = 0 : i64, scratch_operands = 0 : i64, tpu.core_type = #tpu.core_type<tc>, window_params = [{transform_indices = @transform_0, window_bounds = array<i64: 8, 32>}, {transform_indices = @transform_1, window_bounds = array<i64: 8, 32>}, {transform_indices = @transform_2, window_bounds = array<i64: 8, 1>}, {transform_indices = @transform_3, window_bounds = array<i64: 1, 1, 1>}]} {
    %c0 = arith.constant 0 : index
    %c0_0 = arith.constant 0 : index
    %0 = vector.load %arg1[%c0, %c0_0] : memref<8x32xf32, #tpu.memory_space<vmem>>, vector<8x32xf32>
    %c0_1 = arith.constant 0 : index
    %c0_2 = arith.constant 0 : index
    %1 = vector.load %arg2[%c0_1, %c0_2] : memref<8x32xf32, #tpu.memory_space<vmem>>, vector<8x32xf32>
    %c0_3 = arith.constant 0 : index
    %c0_4 = arith.constant 0 : index
    %2 = vector.load %arg3[%c0_3, %c0_4] : memref<8x1xf32, #tpu.memory_space<vmem>>, vector<8x1xf32>
    %3 = arith.subf %0, %1 : vector<8x32xf32>
    %cst = arith.constant 9.99999997E-7 : f32
    %4 = vector.broadcast %cst : f32 to vector<8x32xf32>
    %5 = arith.addf %3, %4 : vector<8x32xf32>
    %6 = arith.mulf %5, %5 : vector<8x32xf32>
    %cst_5 = arith.constant dense<0.000000e+00> : vector<8xf32>
    %7 = vector.multi_reduction <add>, %6, %cst_5 [1] : vector<8x32xf32> to vector<8xf32>
    %8 = vector.shape_cast %7 : vector<8xf32> to vector<8x1xf32>
    %9 = math.sqrt %8 : vector<8x1xf32>
    %cst_6 = arith.constant 2.000000e+00 : f32
    %10 = vector.broadcast %cst_6 : f32 to vector<8x1xf32>
    %11 = arith.subf %10, %9 : vector<8x1xf32>
    %cst_7 = arith.constant 0.000000e+00 : f32
    %12 = vector.broadcast %cst_7 : f32 to vector<8x1xf32>
    %13 = arith.maximumf %11, %12 : vector<8x1xf32>
    %14 = arith.mulf %2, %8 : vector<8x1xf32>
    %cst_8 = arith.constant 1.000000e+00 : f32
    %15 = vector.broadcast %cst_8 : f32 to vector<8x1xf32>
    %16 = arith.subf %15, %2 : vector<8x1xf32>
    %17 = arith.mulf %13, %13 : vector<8x1xf32>
    %18 = arith.mulf %16, %17 : vector<8x1xf32>
    %19 = arith.addf %14, %18 : vector<8x1xf32>
    %20 = vector.shape_cast %19 : vector<8x1xf32> to vector<1x8x1xf32>
    %cst_9 = arith.constant dense<0.000000e+00> : vector<1xf32>
    %21 = vector.multi_reduction <add>, %20, %cst_9 [1, 2] : vector<1x8x1xf32> to vector<1xf32>
    %22 = vector.shape_cast %21 : vector<1xf32> to vector<1x1x1xf32>
    %23 = vector.extract %22[0, 0, 0] : f32 from vector<1x1x1xf32>
    %24 = vector.broadcast %23 : f32 to vector<1x1x1xf32>
    %c0_10 = arith.constant 0 : index
    %c0_11 = arith.constant 0 : index
    %c0_12 = arith.constant 0 : index
    %25 = vector.load %arg4[%c0_10, %c0_11, %c0_12] : memref<1x1x1xf32, #tpu.memory_space<vmem>>, vector<1x1x1xf32>
    tpu.vector_store %arg4[%c0_10, %c0_11, %c0_12], %24 {strides = array<i32>} : memref<1x1x1xf32, #tpu.memory_space<vmem>>, vector<1x1x1xf32>,
    return
  }
  func.func @transform_0(%arg0: i32) -> (i32, i32) {
    %c0_i32 = arith.constant 0 : i32
    %c0_i32_0 = arith.constant 0 : i32
    return %arg0, %c0_i32 : i32, i32
  }
  func.func @transform_1(%arg0: i32) -> (i32, i32) {
    %c0_i32 = arith.constant 0 : i32
    %c0_i32_0 = arith.constant 0 : i32
    return %arg0, %c0_i32 : i32, i32
  }
  func.func @transform_2(%arg0: i32) -> (i32, i32) {
    %c0_i32 = arith.constant 0 : i32
    %c0_i32_0 = arith.constant 0 : i32
    return %arg0, %c0_i32 : i32, i32
  }
  func.func @transform_3(%arg0: i32) -> (i32, i32, i32) {
    %c0_i32 = arith.constant 0 : i32
    %c0_i32_0 = arith.constant 0 : i32
    %c0_i32_1 = arith.constant 0 : i32
    return %arg0, %c0_i32, %c0_i32_0 : i32, i32, i32
  }
}

</mosaic_0001>

<bundles_post_ra>
// kernel: tpu_custom_call.1
= control target key start
LH: loop header
LB: loop body
LE: loop exit
PB: predicated region body
PF: predicated region fallthrough
CT: control target
= control target key end

     0   :  { %8 = vsyncpa [#allocation3], 0  ;;  %s164_s0 = inlined_call_operand.vmem [shape: f32[8,32], index: 0, kind: input, shape index: {}]   ;;  %s165_s1 = inlined_call_operand.hbm [shape: f32[8,32], index: 1, kind: input, shape index: {}]   ;;  %s166_s2 = inlined_call_operand.vmem [shape: f32[8,1], index: 2, kind: input, shape index: {}]   ;;  %s167_s3 = inlined_call_operand.hbm [shape: f32[1,1,1], index: 3, kind: output, shape index: {}]  }
   0x1   :  { %9 = vsyncpa [#allocation4], 0  ;;  %s130_s12 = smov [#allocation2]  }
   0x2   :  { %s18_s13 = sshll.u32 %s130_s12, 4  ;;  %s19_s13 = int_to_ptr.vmem [resolvable:$true] %s18_s13 }
   0x3   :  { %s94_s14 = scalar_lea.vmem %s19_s13, 128  ;;  %p99_p1 = scmp.lt.s32.totalorder %s19_s13, %s19_s13 }
   0x4   :  { %p95_p0 = scmp.ne.s32.totalorder %s19_s13, %s94_s14  ;;  %p100_p2 = scmp.lt.s32.totalorder %s94_s14, %s94_s14 }
   0x6   :  { %p101_p3 = por %p100_p2, %p99_p1 }
   0x8   :  { %p102_p4 = pnand %p101_p3, %p95_p0 }
   0xa   :  { %105 = shalt.err (!%p102_p4)
}
   0xb   :  { %21 = dma.hbm_to_vmem [thread:$0]  %s165_s1, 128, %s19_s13, [#allocation3]  }
   0xc   :  { %126 = dma.done.wait [#allocation3], 128  }
   0xd   :  { %127 = vsyncadd [#allocation3], 4294967168  ;;  %v27_v0 = vld [vmem:[%s164_s0] sm:$0xff]  ;;  %vm33_vm0 = vcmask 261120   ;;  %vm51_vm3 = vcmask 7168   ;;  %s131_s0 = smov [#allocation5]  }
   0xe   :  { %v28_v1 = vld [vmem:[#allocation2] sm:$0xff]  ;;  %s71_s20 = sshll.u32 %s131_s0, 4  ;;  %vm63_vm4 = vcmask 0   ;;  %s72_s20 = int_to_ptr.vmem [resolvable:$true] %s71_s20 }
   0xf   :  { %v30_v2 = vsub.f32 %v27_v0, %v28_v1  ;;  %v29_v13 = vld [vmem:[%s166_s2] sm:$0xff]  ;;  %s106_s21 = scalar_lea.vmem %s72_s20, 16  ;;  %s110_s22 = scalar_lea.vmem %s72_s20, 32 }
  0x10   :  { %v47_v15 = vsub.f32 1.0, %v29_v13  ;;  %p107_p5 = scmp.ne.s32.totalorder %s72_s20, %s106_s21  ;;  %p111_p6 = scmp.lt.s32.totalorder %s72_s20, %s72_s20 }
  0x11   :  { %v31_v3 = vadd.f32 1e-06, %v30_v2  ;;  %p112_p7 = scmp.lt.s32.totalorder %s110_s22, %s106_s21 }
  0x13   :  { %v32_v4 = vmul.f32 %v31_v3, %v31_v3  ;;  %p113_p8 = por %p112_p7, %p111_p6 }
  0x15   :  { %v34_v5 = vsel %vm33_vm0, %v32_v4, 0.0  ;;  %p114_p9 = pnand %p113_p8, %p107_p5 }
  0x16   :  { %35 = vadd.xlane.f32.xlu0 %v34_v5 }
  0x9f   :  { %v36_v6 = vpop.xlane.xlu0 %35 }
  0xa0   :  { %84 = vrsqrt.f32 %v36_v6  ;;  %vm39_vm1 = vcmp.eq.f32.partialorder %v36_v6, inf  ;;  %v42_v9 = vand.u32 2147483648, %v36_v6  ;;  %vm41_vm2 = vcmp.eq.f32.partialorder %v36_v6, 0.0 }
  0xa1   :  { %v46_v17 = vmul.f32 %v36_v6, %v29_v13 }
  0xad   :  { %v85_v7 = vpop.eup %84 }
  0xae   :  { %v38_v8 = vmul.f32 %v85_v7, %v36_v6 }
  0xb0   :  { %v40_v10 = vsel %vm39_vm1, %v36_v6, %v38_v8 }
  0xb1   :  { %v43_v11 = vsel %vm41_vm2, %v42_v9, %v40_v10 }
  0xb2   :  { %v44_v12 = vsub.f32 2.0, %v43_v11 }
  0xb4   :  { %v45_v14 = vmax.f32 %v44_v12, 0.0 }
  0xb6   :  { %v48_v16 = vmul.f32 %v45_v14, %v45_v14 }
  0xb8   :  { %v49_v18 = vmul.f32 %v48_v16, %v47_v15 }
  0xba   :  { %v50_v19 = vadd.f32 %v49_v18, %v46_v17 }
  0xbc   :  { %v52_v20 = vsel %vm51_vm3, %v50_v19, 0.0 }
  0xbd   :  { %53 = vadd.xlane.f32.xlu0 %v52_v20 }
 0x146   :  { %v54_v21 = vpop.xlane.xlu0 %53 }
 0x147   :  { %v55_v22 = vrot.slane %v54_v21, 4 }
 0x149   :  { %v56_v23 = vadd.f32 %v55_v22, %v54_v21 }
 0x14b   :  { %v57_v24 = vrot.slane %v56_v23, 2 }
 0x14d   :  { %v58_v25 = vadd.f32 %v57_v24, %v56_v23 }
 0x14f   :  { %v59_v26 = vrot.slane %v58_v25, 1 }
 0x151   :  { %v60_v27 = vadd.f32 %v59_v26, %v58_v25 }
 0x153   :  { %80 = vpush %v60_v27 }
 0x184   :  { %s81_s2 = spop %80 }
 0x185   :  { %v62_v28 = vstv %s81_s2 }
 0x186   :  { %64 = vst.msk [vmem:[#allocation5] sm:$0x1] %vm63_vm4, %v62_v28 }
 0x187   :  { %117 = shalt.err (!%p114_p9)
}
 0x188   :  { %74 = dma.vmem_to_hbm [thread:$0]  %s72_s20, 16, %s167_s3, [#allocation4]  }
 0x189   :  { %128 = dma.done.wait [#allocation4], 16  }
 0x18a   :  { %129 = vsyncadd [#allocation4], 4294967280 }
 0x18b   :  { %78 = vsyncpa [#allocation3], 1 }
 0x18c   :  { %79 = vsyncpa [#allocation4], 1 }

</bundles_post_ra>
